<compile_context>
chip_gen: v7x
topology: tpu7x:2x2x1
jax: 0.10.0
libtpu: 0.0.40
codegen_flags: <defaults>
</compile_context>

<pallas_src>
import functools

import jax
import jax.numpy as jnp
from jax.experimental import pallas as pl
from jax.experimental.pallas import tpu as pltpu


def _shortcut_pad_kernel(x_ref, o_ref, *, pad_cols):
    """Channel zero-pad on a lane-dense flattened layout.

    x_ref: (bt, c * hw4)            -- even/even spatial quarter, flattened minor dim.
    o_ref: (bt, (c + 2*pad) * hw4)  -- same layout with `pad` zero channels on each side.

    pad_cols (= pad*hw4) and in_cols (= c*hw4) are multiples of 128 for all CIFAR stages,
    so the three stores below are unmasked, lane-aligned full-width stores.
    """
    bt, in_cols = x_ref.shape
    if pad_cols > 0:
        z = jnp.zeros((bt, pad_cols), dtype=o_ref.dtype)
        o_ref[:, :pad_cols] = z
        o_ref[:, pad_cols + in_cols:] = z
    o_ref[:, pad_cols:pad_cols + in_cols] = x_ref[...].astype(o_ref.dtype)


def _pick_batch_tile(b, per_batch_bytes, budget_bytes=4 << 20):
    """Pick the per-grid-step batch tile.

    - Whole batch in one block when it fits the budget (single-TC v5e/v6e: no per-step
      overhead, biggest DMA; double-buffered footprint ~2*budget stays under the default
      scoped VMEM of every generation).
    - If the batch is large enough, split into two >=512 KiB blocks so the "parallel"
      grid axis can shard across v7x's 2 TensorCores (harmless on 1-TC chips).
    - Otherwise tile in multiples of 8 (BlockSpec sublane rule) under the budget; the
      caller uses a cdiv grid, so non-divisor batches get a padded/masked tail block
      instead of degrading to bt=1.
    """
    per_batch_bytes = max(per_batch_bytes, 1)
    cap = max(1, budget_bytes // per_batch_bytes)
    if b <= cap:
        half = b // 2
        if half >= 8 and half % 8 == 0 and half * per_batch_bytes >= (512 << 10):
            return half
        return b
    bt = max(8, (cap // 8) * 8)
    return min(bt, b)


def lambda_layer_option_a(x_nchw, planes):
    """JAX/Pallas equivalent of
    F.pad(x[:, :, ::2, ::2], (0, 0, 0, 0, planes // 4, planes // 4), 'constant', 0)
    with x in NCHW (output is NCHW too)."""
    b, c, h, w = x_nchw.shape
    pad = planes // 4
    c_out = c + 2 * pad
    h2, w2 = -(-h // 2), -(-w // 2)           # ceil, matches PyTorch ::2 for odd dims too
    hw4 = h2 * w2

    # Spatial stride-2 decimation as an XLA fused strided-slice copy (reads ~half of x,
    # writes only the needed quarter). The reshape to one lane-dense minor dim is a free
    # row-major merge; no transposes anywhere.
    x_q = x_nchw[:, :, ::2, ::2].reshape(b, c * hw4)

    itemsize = jnp.dtype(x_nchw.dtype).itemsize
    per_batch_bytes = (c + c_out) * hw4 * itemsize
    bt = _pick_batch_tile(b, per_batch_bytes)
    grid = (-(-b // bt),)                     # cdiv: tail block is padded/masked by Pallas

    kernel = functools.partial(_shortcut_pad_kernel, pad_cols=pad * hw4)

    out_flat = pl.pallas_call(
        kernel,
        out_shape=jax.ShapeDtypeStruct((b, c_out * hw4), x_nchw.dtype),
        grid=grid,
        in_specs=[pl.BlockSpec((bt, c * hw4), lambda i: (i, 0))],
        out_specs=pl.BlockSpec((bt, c_out * hw4), lambda i: (i, 0)),
        compiler_params=pltpu.CompilerParams(
            dimension_semantics=("parallel",)),
    )(x_q)

    # Free split reshape back to NCHW -- no output transpose needed.
    return out_flat.reshape(b, c_out, h2, w2)


class LambdaLayer:
    """Mirror of the PyTorch module: wraps an arbitrary callable."""

    def __init__(self, lambd):
        self.lambd = lambd

    def __call__(self, x):
        return self.lambd(x)


if __name__ == "__main__":
    key = jax.random.PRNGKey(0)

    B, C, H, W = 2, 4, 16, 16          # small NCHW input
    planes = 8                         # downstream block width -> pad = planes // 4 = 2
    x = jax.random.normal(key, (B, C, H, W), dtype=jnp.float32)

    # LambdaLayer has no parameters; its "lambd" is the Pallas-backed shortcut.
    layer = LambdaLayer(lambda t: lambda_layer_option_a(t, planes))

    out = layer(x)
    out = jax.block_until_ready(out)

    # Pure-JAX reference of the PyTorch lambda (NCHW):
    pad = planes // 4
    ref = jnp.pad(x[:, :, ::2, ::2], ((0, 0), (pad, pad), (0, 0), (0, 0)))

    assert out.shape == ref.shape, (out.shape, ref.shape)
    assert out.dtype == ref.dtype
    assert jnp.allclose(out, ref), "mismatch vs reference"
    print("KERNEL_OK")
</pallas_src>

<mosaic_0001>
module attributes {stable_mosaic.version = 11 : i64} {
  func.func @_shortcut_pad_kernel(%arg0: i32, %arg1: memref<2x256xf32, #tpu.memory_space<vmem>>, %arg2: memref<2x512xf32, #tpu.memory_space<vmem>>) attributes {dimension_semantics = [#tpu.dimension_semantics<parallel>], iteration_bounds = array<i64: 1>, scalar_prefetch = 0 : i64, scratch_operands = 0 : i64, tpu.core_type = #tpu.core_type<tc>, window_params = [{transform_indices = @transform_0, window_bounds = array<i64: 2, 256>}, {transform_indices = @transform_1, window_bounds = array<i64: 2, 512>}]} {
    %cst = arith.constant 0.000000e+00 : f32
    %0 = vector.broadcast %cst : f32 to vector<2x128xf32>
    %c0 = arith.constant 0 : index
    %c0_0 = arith.constant 0 : index
    %1 = vector.load %arg2[%c0, %c0_0] : memref<2x512xf32, #tpu.memory_space<vmem>>, vector<2x128xf32>
    tpu.vector_store %arg2[%c0, %c0_0], %0 {strides = array<i32>} : memref<2x512xf32, #tpu.memory_space<vmem>>, vector<2x128xf32>,
    %c0_1 = arith.constant 0 : index
    %c384 = arith.constant 384 : index
    %2 = vector.load %arg2[%c0_1, %c384] : memref<2x512xf32, #tpu.memory_space<vmem>>, vector<2x128xf32>
    tpu.vector_store %arg2[%c0_1, %c384], %0 {strides = array<i32>} : memref<2x512xf32, #tpu.memory_space<vmem>>, vector<2x128xf32>,
    %c0_2 = arith.constant 0 : index
    %c0_3 = arith.constant 0 : index
    %3 = vector.load %arg1[%c0_2, %c0_3] : memref<2x256xf32, #tpu.memory_space<vmem>>, vector<2x256xf32>
    %c0_4 = arith.constant 0 : index
    %c128 = arith.constant 128 : index
    %4 = vector.load %arg2[%c0_4, %c128] : memref<2x512xf32, #tpu.memory_space<vmem>>, vector<2x256xf32>
    tpu.vector_store %arg2[%c0_4, %c128], %3 {strides = array<i32>} : memref<2x512xf32, #tpu.memory_space<vmem>>, vector<2x256xf32>,
    return
  }
  func.func @transform_0(%arg0: i32) -> (i32, i32) {
    %c0_i32 = arith.constant 0 : i32
    %c0_i32_0 = arith.constant 0 : i32
    return %arg0, %c0_i32 : i32, i32
  }
  func.func @transform_1(%arg0: i32) -> (i32, i32) {
    %c0_i32 = arith.constant 0 : i32
    %c0_i32_0 = arith.constant 0 : i32
    return %arg0, %c0_i32 : i32, i32
  }
}

</mosaic_0001>

<bundles_post_ra>
// kernel: tpu_custom_call.1
= control target key start
LH: loop header
LB: loop body
LE: loop exit
PB: predicated region body
PF: predicated region fallthrough
CT: control target
= control target key end

     0   :  { %6 = vsyncpa [#allocation3], 0  ;;  %s128_s0 = inlined_call_operand.hbm [shape: f32[2,256], index: 0, kind: input, shape index: {}]   ;;  %s129_s1 = inlined_call_operand.hbm [shape: f32[2,512], index: 1, kind: output, shape index: {}]  }
   0x1   :  { %7 = vsyncpa [#allocation4], 0  ;;  %s91_s6 = smov [#allocation2]   ;;  %s43_s10 = scalar_lea.hbm %s128_s0, 64 }
   0x2   :  { %s14_s7 = sshll.u32 %s91_s6, 4  ;;  %p44_p0 = scmp.ne.s32.totalorder %s128_s0, %s43_s10  ;;  %s15_s7 = int_to_ptr.vmem [resolvable:$true] %s14_s7 }
   0x3   :  { %p47_p1 = scmp.lt.u32.totalorder %s43_s10, %s128_s0 }
   0x5   :  { %p49_p2 = pnand %p47_p1, %p44_p0 }
   0x7   :  { %52 = shalt.err (!%p49_p2)
}
   0x8   :  { %s53_s15 = scalar_lea.vmem %s15_s7, 64  ;;  %p58_p4 = scmp.lt.s32.totalorder %s15_s7, %s15_s7 }
   0x9   :  { %p54_p3 = scmp.ne.s32.totalorder %s15_s7, %s53_s15  ;;  %p59_p5 = scmp.lt.s32.totalorder %s53_s15, %s53_s15 }
   0xb   :  { %p60_p6 = por %p59_p5, %p58_p4 }
   0xd   :  { %p61_p7 = pnand %p60_p6, %p54_p3 }
   0xf   :  { %64 = shalt.err (!%p61_p7)
}
  0x10   :  { %17 = dma.hbm_to_vmem [thread:$0]  %s128_s0, 64, %s15_s7, [#allocation3]  }
  0x11   :  { %87 = dma.done.wait [#allocation3], 64  }
  0x12   :  { %88 = vsyncadd [#allocation3], 4294967232  ;;  %v92_v0 = vmov 0.0   ;;  %s93_s18 = smov [#allocation5]   ;;  %v23_v1 = vld [vmem:[#allocation2] sm:$0xf] }
  0x13   :  { %21 = vst [vmem:[#allocation5] sm:$0x3] %v92_v0  ;;  %22 = vst [vmem:[#allocation5 + $0x6] sm:$0x3] %v92_v0  ;;  %s31_s19 = sshll.u32 %s93_s18, 4  ;;  %s32_s19 = int_to_ptr.vmem [resolvable:$true] %s31_s19 }
  0x14   :  { %24 = vst [vmem:[#allocation5 + $0x2] sm:$0xf] %v23_v1  ;;  %s65_s20 = scalar_lea.vmem %s32_s19, 128  ;;  %p70_p9 = scmp.lt.s32.totalorder %s32_s19, %s32_s19 }
  0x15   :  { %p66_p8 = scmp.ne.s32.totalorder %s32_s19, %s65_s20  ;;  %p71_p10 = scmp.lt.s32.totalorder %s65_s20, %s65_s20 }
  0x17   :  { %p72_p11 = por %p71_p10, %p70_p9 }
  0x19   :  { %p73_p12 = pnand %p72_p11, %p66_p8 }
  0x1b   :  { %76 = shalt.err (!%p73_p12)
}
  0x1c   :  { %s77_s0 = scalar_lea.hbm %s129_s1, 128 }
  0x1d   :  { %p78_p13 = scmp.ne.s32.totalorder %s129_s1, %s77_s0  ;;  %p81_p0 = scmp.lt.u32.totalorder %s77_s0, %s129_s1 }
  0x1f   :  { %p83_p1 = pnand %p81_p0, %p78_p13 }
  0x21   :  { %86 = shalt.err (!%p83_p1)
}
  0x22   :  { %34 = dma.vmem_to_hbm [thread:$0]  %s32_s19, 128, %s129_s1, [#allocation4]  }
  0x23   :  { %89 = dma.done.wait [#allocation4], 128  }
  0x24   :  { %90 = vsyncadd [#allocation4], 4294967168 }
  0x25   :  { %38 = vsyncpa [#allocation3], 1 }
  0x26   :  { %39 = vsyncpa [#allocation4], 1 }

</bundles_post_ra>
